<compile_context>
chip_gen: v7x
topology: tpu7x:2x2x1
jax: 0.10.0
libtpu: 0.0.40
codegen_flags: <defaults>
</compile_context>

<pallas_src>
import jax
import jax.numpy as jnp
from jax.experimental import pallas as pl
from jax.experimental.pallas import tpu as pltpu

HIDDEN = 64
HIDDEN_PAD = 128  # pad the hidden axis to a full lane width


def _round_up(x, m):
    return (x + m - 1) // m * m


def rnd_mlp_kernel(xT_ref, w1_ref, b1_ref, w2_ref, b2_ref, w3_ref, b3_ref, o_ref):
    # xT_ref: (state_dim, TILE_B) f32  -- batch on the lane axis.
    # w1_ref: (128, state_dim), w2_ref: (128, 128), w3_ref: (1, 128)  [bf16 or f32]
    # b1/b2:  (128, 1) f32, b3: (1, 1) f32.  All weights resident (constant index_map).
    w1 = w1_ref[...]
    w2 = w2_ref[...]
    w3 = w3_ref[...]
    wdt = w1.dtype                                   # bf16 (fast path) or f32

    x = xT_ref[...].astype(wdt)                      # (S, TB)
    h1 = jnp.dot(w1, x, preferred_element_type=jnp.float32) + b1_ref[...]
    h1 = jnp.maximum(h1, 0.0)                        # (128, TB) f32
    h2 = jnp.dot(w2, h1.astype(wdt), preferred_element_type=jnp.float32) + b2_ref[...]
    h2 = jnp.maximum(h2, 0.0)                        # (128, TB) f32
    out = jnp.dot(w3, h2.astype(wdt), preferred_element_type=jnp.float32)
    o_ref[...] = out + b3_ref[...]                   # (1, TB); b3 (1,1) broadcasts


def rnd_model_forward(states, params, *, tile_b=None):
    """states: [B, state_dim] f32 -> [B, 1] f32 (matches PyTorch RND_Model.forward)."""
    w1t, b1, w2t, b2, w3r, b3 = params               # already padded / transposed
    B, S = states.shape
    Hp = w1t.shape[0]

    # --- batch tile: multiple of 128 (lane-dense), big enough to amortize the
    # ~0.35us/step overhead, but >= 2 tiles when possible so v7x's 2nd TC gets work.
    B128 = _round_up(max(B, 1), 128)
    if tile_b is None:
        if B128 <= 128:
            tile_b = 128
        else:
            tile_b = min(4096, _round_up(pl.cdiv(B128, 2), 128))
    else:
        tile_b = min(_round_up(tile_b, 128), B128)
    B_pad = _round_up(B, tile_b)
    num_tiles = B_pad // tile_b

    # One transpose in the wrapper puts the batch on the lane axis for the whole
    # kernel (caveat from the review: one extra HBM round trip of the input).
    xT = jnp.pad(states, ((0, B_pad - B), (0, 0))).T          # (S, B_pad) f32

    w_item = jnp.dtype(w1t.dtype).itemsize
    weights_bytes = (w1t.size + w2t.size + w3r.size) * w_item \
        + (b1.size + b2.size + b3.size) * 4

    cost = pl.CostEstimate(
        flops=2 * B_pad * (S * HIDDEN + HIDDEN * HIDDEN + HIDDEN),
        transcendentals=0,
        bytes_accessed=int(4 * (B_pad * S + B_pad) + weights_bytes),
    )

    # VMEM working set: double-buffered x/out tiles + f32/bf16 h1/h2 temporaries
    # + resident weights (double-buffered by default).  Floor at 16 MiB.
    block_bytes = 4 * tile_b * (2 * S + 2 * 1 + 3 * Hp)
    vmem_limit = int(min(96 << 20, max(16 << 20, 2 * weights_bytes + 2 * block_bytes)))

    out_row = pl.pallas_call(
        rnd_mlp_kernel,
        out_shape=jax.ShapeDtypeStruct((1, B_pad), jnp.float32),
        grid=(num_tiles,),
        in_specs=[
            pl.BlockSpec((S, tile_b), lambda i: (0, i)),      # xT tile (lane-dense)
            pl.BlockSpec((Hp, S), lambda i: (0, 0)),          # w1^T  (resident)
            pl.BlockSpec((Hp, 1), lambda i: (0, 0)),          # b1
            pl.BlockSpec((Hp, Hp), lambda i: (0, 0)),         # w2^T
            pl.BlockSpec((Hp, 1), lambda i: (0, 0)),          # b2
            pl.BlockSpec((1, Hp), lambda i: (0, 0)),          # w3 row
            pl.BlockSpec((1, 1), lambda i: (0, 0)),           # b3
        ],
        out_specs=pl.BlockSpec((1, tile_b), lambda i: (0, i)),  # lane-dense out
        compiler_params=pltpu.CompilerParams(
            dimension_semantics=("parallel",),
            vmem_limit_bytes=vmem_limit,
        ),
        cost_estimate=cost,
    )(xT, w1t, b1, w2t, b2, w3r, b3)

    return out_row[0, :B].reshape(B, 1)


def init_params(key, state_dim):
    """PyTorch-equivalent nn.Linear init; weights stored (in_features, out_features)."""
    ks = jax.random.split(key, 6)

    def lin(kw, kb, fan_in, fan_out):
        bound = 1.0 / jnp.sqrt(fan_in)
        w = jax.random.uniform(kw, (fan_in, fan_out), jnp.float32, -bound, bound)
        b = jax.random.uniform(kb, (1, fan_out), jnp.float32, -bound, bound)
        return w, b

    w1, b1 = lin(ks[0], ks[1], state_dim, HIDDEN)
    w2, b2 = lin(ks[2], ks[3], HIDDEN, HIDDEN)
    w3, b3 = lin(ks[4], ks[5], HIDDEN, 1)
    return (w1, b1, w2, b2, w3, b3)


def prepare_params(params, *, use_bf16=True):
    """Pre-transpose for the batch-on-lanes dataflow, zero-pad hidden 64 -> 128,
    and (optionally) store the matmul weights in bf16 for single-pass MXU.
    Padded rows/cols/bias entries are exactly zero, so ReLU(0)=0 contributes nothing."""
    w1, b1, w2, b2, w3, b3 = params
    sd = w1.shape[0]
    Hp = HIDDEN_PAD
    wdt = jnp.bfloat16 if use_bf16 else jnp.float32
    w1t = jnp.zeros((Hp, sd), jnp.float32).at[:HIDDEN, :].set(w1.T).astype(wdt)
    b1c = jnp.zeros((Hp, 1), jnp.float32).at[:HIDDEN, :].set(b1.T)
    w2t = jnp.zeros((Hp, Hp), jnp.float32).at[:HIDDEN, :HIDDEN].set(w2.T).astype(wdt)
    b2c = jnp.zeros((Hp, 1), jnp.float32).at[:HIDDEN, :].set(b2.T)
    w3r = jnp.zeros((1, Hp), jnp.float32).at[:, :HIDDEN].set(w3.T).astype(wdt)
    b3c = b3.reshape(1, 1).astype(jnp.float32)
    return (w1t, b1c, w2t, b2c, w3r, b3c)


def rnd_model_ref(states, params):
    """Exact f32 reference (PyTorch module semantics)."""
    w1, b1, w2, b2, w3, b3 = params
    h1 = jnp.maximum(states @ w1 + b1, 0.0)
    h2 = jnp.maximum(h1 @ w2 + b2, 0.0)
    return h2 @ w3 + b3


def rnd_model_ref_bf16(states, params):
    """Reference matching the kernel's bf16-matmul-input / f32-accumulate numerics."""
    w1, b1, w2, b2, w3, b3 = params
    bf = jnp.bfloat16
    h1 = jnp.maximum(jnp.dot(states.astype(bf), w1.astype(bf),
                             preferred_element_type=jnp.float32) + b1, 0.0)
    h2 = jnp.maximum(jnp.dot(h1.astype(bf), w2.astype(bf),
                             preferred_element_type=jnp.float32) + b2, 0.0)
    return jnp.dot(h2.astype(bf), w3.astype(bf),
                   preferred_element_type=jnp.float32) + b3


if __name__ == "__main__":
    key = jax.random.PRNGKey(0)
    k_params, k_states, k_params2, k_states2 = jax.random.split(key, 4)

    # --- check 1: f32 weight path, single tile -- must match PyTorch math to 1e-5 ---
    batch, state_dim = 8, 16
    params = init_params(k_params, state_dim)
    kparams_f32 = prepare_params(params, use_bf16=False)
    states = jax.random.normal(k_states, (batch, state_dim), jnp.float32)

    out = jax.block_until_ready(rnd_model_forward(states, kparams_f32))
    ref = rnd_model_ref(states, params)
    assert out.shape == (batch, 1), out.shape
    assert jnp.allclose(out, ref, atol=1e-5, rtol=1e-5), \
        float(jnp.max(jnp.abs(out - ref)))

    # --- check 2: bf16 MXU path, multi-tile grid (default tile heuristic) ---------
    batch2, state_dim2 = 250, 24
    params2 = init_params(k_params2, state_dim2)
    kparams_bf16 = prepare_params(params2, use_bf16=True)
    states2 = jax.random.normal(k_states2, (batch2, state_dim2), jnp.float32)

    out2 = jax.block_until_ready(rnd_model_forward(states2, kparams_bf16))
    ref2_bf = rnd_model_ref_bf16(states2, params2)   # matched-numerics reference
    ref2_f32 = rnd_model_ref(states2, params2)       # exact module reference
    assert out2.shape == (batch2, 1), out2.shape
    assert jnp.allclose(out2, ref2_bf, atol=5e-3, rtol=5e-3), \
        float(jnp.max(jnp.abs(out2 - ref2_bf)))
    assert jnp.allclose(out2, ref2_f32, atol=5e-2, rtol=5e-2), \
        float(jnp.max(jnp.abs(out2 - ref2_f32)))

    print("KERNEL_OK")
</pallas_src>

<mosaic_0001>
module attributes {stable_mosaic.version = 11 : i64} {
  func.func @rnd_mlp_kernel(%arg0: i32, %arg1: memref<16x128xf32, #tpu.memory_space<vmem>>, %arg2: memref<128x16xf32, #tpu.memory_space<vmem>>, %arg3: memref<128x1xf32, #tpu.memory_space<vmem>>, %arg4: memref<128x128xf32, #tpu.memory_space<vmem>>, %arg5: memref<128x1xf32, #tpu.memory_space<vmem>>, %arg6: memref<1x128xf32, #tpu.memory_space<vmem>>, %arg7: memref<1x1xf32, #tpu.memory_space<vmem>>, %arg8: memref<1x128xf32, #tpu.memory_space<vmem>>) attributes {dimension_semantics = [#tpu.dimension_semantics<parallel>], iteration_bounds = array<i64: 1>, scalar_prefetch = 0 : i64, scratch_operands = 0 : i64, tpu.core_type = #tpu.core_type<tc>, window_params = [{transform_indices = @transform_0, window_bounds = array<i64: 16, 128>}, {pipeline_mode = #tpu.pipeline_mode<synchronous>, transform_indices = @transform_1, window_bounds = array<i64: 128, 16>}, {pipeline_mode = #tpu.pipeline_mode<synchronous>, transform_indices = @transform_2, window_bounds = array<i64: 128, 1>}, {pipeline_mode = #tpu.pipeline_mode<synchronous>, transform_indices = @transform_3, window_bounds = array<i64: 128, 128>}, {pipeline_mode = #tpu.pipeline_mode<synchronous>, transform_indices = @transform_4, window_bounds = array<i64: 128, 1>}, {pipeline_mode = #tpu.pipeline_mode<synchronous>, transform_indices = @transform_5, window_bounds = array<i64: 1, 128>}, {pipeline_mode = #tpu.pipeline_mode<synchronous>, transform_indices = @transform_6, window_bounds = array<i64: 1, 1>}, {transform_indices = @transform_7, window_bounds = array<i64: 1, 128>}]} {
    %c0 = arith.constant 0 : index
    %c0_0 = arith.constant 0 : index
    %0 = vector.load %arg2[%c0, %c0_0] : memref<128x16xf32, #tpu.memory_space<vmem>>, vector<128x16xf32>
    %c0_1 = arith.constant 0 : index
    %c0_2 = arith.constant 0 : index
    %1 = vector.load %arg4[%c0_1, %c0_2] : memref<128x128xf32, #tpu.memory_space<vmem>>, vector<128x128xf32>
    %c0_3 = arith.constant 0 : index
    %c0_4 = arith.constant 0 : index
    %2 = vector.load %arg6[%c0_3, %c0_4] : memref<1x128xf32, #tpu.memory_space<vmem>>, vector<1x128xf32>
    %c0_5 = arith.constant 0 : index
    %c0_6 = arith.constant 0 : index
    %3 = vector.load %arg1[%c0_5, %c0_6] : memref<16x128xf32, #tpu.memory_space<vmem>>, vector<16x128xf32>
    %cst = arith.constant dense<0.000000e+00> : vector<128x128xf32>
    %4 = tpu.matmul %0, %3, %cst {dimension_numbers = #tpu.dot_dimension_numbers<[1], [0], [0], [1], [0, 0, 1, 1], [], []>} : vector<128x16xf32>, vector<16x128xf32>, vector<128x128xf32> -> vector<128x128xf32>
    %c0_7 = arith.constant 0 : index
    %c0_8 = arith.constant 0 : index
    %5 = vector.load %arg3[%c0_7, %c0_8] : memref<128x1xf32, #tpu.memory_space<vmem>>, vector<128x1xf32>
    %6 = vector.broadcast %5 : vector<128x1xf32> to vector<128x128xf32>
    %7 = arith.addf %4, %6 : vector<128x128xf32>
    %cst_9 = arith.constant 0.000000e+00 : f32
    %8 = vector.broadcast %cst_9 : f32 to vector<128x128xf32>
    %9 = arith.maximumf %7, %8 : vector<128x128xf32>
    %cst_10 = arith.constant dense<0.000000e+00> : vector<128x128xf32>
    %10 = tpu.matmul %1, %9, %cst_10 {dimension_numbers = #tpu.dot_dimension_numbers<[1], [0], [0], [1], [0, 0, 1, 1], [], []>} : vector<128x128xf32>, vector<128x128xf32>, vector<128x128xf32> -> vector<128x128xf32>
    %c0_11 = arith.constant 0 : index
    %c0_12 = arith.constant 0 : index
    %11 = vector.load %arg5[%c0_11, %c0_12] : memref<128x1xf32, #tpu.memory_space<vmem>>, vector<128x1xf32>
    %12 = vector.broadcast %11 : vector<128x1xf32> to vector<128x128xf32>
    %13 = arith.addf %10, %12 : vector<128x128xf32>
    %cst_13 = arith.constant 0.000000e+00 : f32
    %14 = vector.broadcast %cst_13 : f32 to vector<128x128xf32>
    %15 = arith.maximumf %13, %14 : vector<128x128xf32>
    %cst_14 = arith.constant dense<0.000000e+00> : vector<1x128xf32>
    %16 = tpu.matmul %2, %15, %cst_14 {dimension_numbers = #tpu.dot_dimension_numbers<[1], [0], [0], [1], [0, 0, 1, 1], [], []>} : vector<1x128xf32>, vector<128x128xf32>, vector<1x128xf32> -> vector<1x128xf32>
    %c0_15 = arith.constant 0 : index
    %c0_16 = arith.constant 0 : index
    %17 = vector.load %arg7[%c0_15, %c0_16] : memref<1x1xf32, #tpu.memory_space<vmem>>, vector<1x1xf32>
    %18 = vector.broadcast %17 : vector<1x1xf32> to vector<1x128xf32>
    %19 = arith.addf %16, %18 : vector<1x128xf32>
    %c0_17 = arith.constant 0 : index
    %c0_18 = arith.constant 0 : index
    %20 = vector.load %arg8[%c0_17, %c0_18] : memref<1x128xf32, #tpu.memory_space<vmem>>, vector<1x128xf32>
    tpu.vector_store %arg8[%c0_17, %c0_18], %19 {strides = array<i32>} : memref<1x128xf32, #tpu.memory_space<vmem>>, vector<1x128xf32>,
    return
  }
  func.func @transform_0(%arg0: i32) -> (i32, i32) {
    %c0_i32 = arith.constant 0 : i32
    %c0_i32_0 = arith.constant 0 : i32
    return %c0_i32, %arg0 : i32, i32
  }
  func.func @transform_1(%arg0: i32) -> (i32, i32) {
    %c0_i32 = arith.constant 0 : i32
    %c0_i32_0 = arith.constant 0 : i32
    %c0_i32_1 = arith.constant 0 : i32
    return %c0_i32, %c0_i32_0 : i32, i32
  }
  func.func @transform_2(%arg0: i32) -> (i32, i32) {
    %c0_i32 = arith.constant 0 : i32
    %c0_i32_0 = arith.constant 0 : i32
    %c0_i32_1 = arith.constant 0 : i32
    return %c0_i32, %c0_i32_0 : i32, i32
  }
  func.func @transform_3(%arg0: i32) -> (i32, i32) {
    %c0_i32 = arith.constant 0 : i32
    %c0_i32_0 = arith.constant 0 : i32
    %c0_i32_1 = arith.constant 0 : i32
    return %c0_i32, %c0_i32_0 : i32, i32
  }
  func.func @transform_4(%arg0: i32) -> (i32, i32) {
    %c0_i32 = arith.constant 0 : i32
    %c0_i32_0 = arith.constant 0 : i32
    %c0_i32_1 = arith.constant 0 : i32
    return %c0_i32, %c0_i32_0 : i32, i32
  }
  func.func @transform_5(%arg0: i32) -> (i32, i32) {
    %c0_i32 = arith.constant 0 : i32
    %c0_i32_0 = arith.constant 0 : i32
    %c0_i32_1 = arith.constant 0 : i32
    return %c0_i32, %c0_i32_0 : i32, i32
  }
  func.func @transform_6(%arg0: i32) -> (i32, i32) {
    %c0_i32 = arith.constant 0 : i32
    %c0_i32_0 = arith.constant 0 : i32
    %c0_i32_1 = arith.constant 0 : i32
    return %c0_i32, %c0_i32_0 : i32, i32
  }
  func.func @transform_7(%arg0: i32) -> (i32, i32) {
    %c0_i32 = arith.constant 0 : i32
    %c0_i32_0 = arith.constant 0 : i32
    return %c0_i32, %arg0 : i32, i32
  }
}

</mosaic_0001>

<bundles_post_ra>
// kernel: tpu_custom_call.1
= control target key start
LH: loop header
LB: loop body
LE: loop exit
PB: predicated region body
PF: predicated region fallthrough
CT: control target
= control target key end

     0   :  { %s1300_s0 = inlined_call_operand.vmem [shape: f32[16,128], index: 0, kind: input, shape index: {}]   ;;  %s1301_s1 = inlined_call_operand.vmem [shape: f32[128,16], index: 1, kind: input, shape index: {}]   ;;  %s1302_s2 = inlined_call_operand.vmem [shape: f32[128,1], index: 2, kind: input, shape index: {}]   ;;  %s1303_s3 = inlined_call_operand.vmem [shape: f32[128,128], index: 3, kind: input, shape index: {}]   ;;  %s1304_s4 = inlined_call_operand.vmem [shape: f32[128,1], index: 4, kind: input, shape index: {}]   ;;  %s1305_s5 = inlined_call_operand.vmem [shape: f32[1,128], index: 5, kind: input, shape index: {}]   ;;  %s1306_s6 = inlined_call_operand.<no memory space> [shape: f32[1,1], index: 6, kind: input, shape index: {}]   ;;  %s1307_s7 = inlined_call_operand.hbm [shape: f32[1,128], index: 7, kind: output, shape index: {}]  }
   0x1   :  { %v12_v0 = vstv %s1306_s6 }
   0x2   :  { %13 = vst [vmem:[#allocation2] sm:$0x1] %v12_v0 }
   0x3   :  { %v62_v1 = vld [vmem:[%s1300_s0] sm:$0xff]  ;;  %v63_v2 = vld [vmem:[%s1300_s0 + $0x8] sm:$0xff]  ;;  %vm160_vm0 = vcmask 130048   ;;  %v1015_v5 = vmov 0   ;;  %v31_v8 = vld [vmem:[%s1301_s1 + $0x10] sm:$0xff] }
   0x4   :  { %v29_v3 = vld [vmem:[%s1301_s1] sm:$0xff]  ;;  %v924_v4 = vpack.c.bf16 %v63_v2, %v62_v1  ;;  %989 = vset.pattern.permute.xlu0 %v1015_v5  ;;  %990 = vset.pattern.permute.xlu1 %v1015_v5  ;;  %v30_v6 = vld [vmem:[%s1301_s1 + $0x8] sm:$0xff]  ;;  %v66_v10 = vld [vmem:[%s1302_s2 + $0x10] sm:$0xff] }
   0x5   :  { %809 = vmatprep.mubr.msk.f32.mxu0 %vm160_vm0, %v29_v3  ;;  %v64_v7 = vld [vmem:[%s1302_s2] sm:$0xff]  ;;  %v65_v9 = vld [vmem:[%s1302_s2 + $0x8] sm:$0xff]  ;;  %92 = vperm.xlu1 %990, %v66_v10   ;;  %v32_v11 = vld [vmem:[%s1301_s1 + $0x18] sm:$0xff] }
   0x6   :  { %925 = vmatprep.subr.bf16.mxu0 %v924_v4  ;;  %82 = vperm.xlu0 %989, %v64_v7   ;;  %v67_v12 = vld [vmem:[%s1302_s2 + $0x18] sm:$0xff]  ;;  %v33_v13 = vld [vmem:[%s1301_s1 + $0x20] sm:$0xff]  ;;  %v34_v15 = vld [vmem:[%s1301_s1 + $0x28] sm:$0xff] }
   0x7   :  { %927 = vmatpush3.bf16.msra.mxu0 %v924_v4  ;;  %v68_v14 = vld [vmem:[%s1302_s2 + $0x20] sm:$0xff]  ;;  %v69_v16 = vld [vmem:[%s1302_s2 + $0x28] sm:$0xff]  ;;  %v35_v17 = vld [vmem:[%s1301_s1 + $0x30] sm:$0xff] }
   0x8   :  { %v70_v18 = vld [vmem:[%s1302_s2 + $0x30] sm:$0xff]  ;;  %v36_v19 = vld [vmem:[%s1301_s1 + $0x38] sm:$0xff]  ;;  %v37_v21 = vld [vmem:[%s1301_s1 + $0x40] sm:$0xff] }
   0x9   :  { %97 = vperm.xlu1 %990, %v67_v12   ;;  %v71_v20 = vld [vmem:[%s1302_s2 + $0x38] sm:$0xff] }
   0xa   :  { %810 = vmatmul.mubr.msk.f32.vlgmr.msra.gmra.mrb[0].mxu0 %vm160_vm0, %v30_v6  ;;  %87 = vperm.xlu0 %989, %v65_v9  }
   0xb   :  { %812 = vmatprep.mubr.msk.f32.mxu0 %vm160_vm0, %v31_v8 }
   0xd   :  { %107 = vperm.xlu1 %990, %v69_v16  }
   0xe   :  { %813 = vmatmul.mubr.msk.f32.gmra.mrb[2].mxu0 %vm160_vm0, %v32_v11  ;;  %102 = vperm.xlu0 %989, %v68_v14  }
   0xf   :  { %815 = vmatprep.mubr.msk.f32.mxu0 %vm160_vm0, %v33_v13 }
  0x12   :  { %816 = vmatmul.mubr.msk.f32.gmra.mrb[4].mxu0 %vm160_vm0, %v34_v15  ;;  %112 = vperm.xlu0 %989, %v70_v18  }
  0x13   :  { %818 = vmatprep.mubr.msk.f32.mxu0 %vm160_vm0, %v35_v17 }
  0x14   :  { %14 = vsyncpa [#allocation4], 0  ;;  %v72_v22 = vld [vmem:[%s1302_s2 + $0x40] sm:$0xff]  ;;  %117 = vperm.xlu1 %990, %v71_v20   ;;  %v38_v23 = vld [vmem:[%s1301_s1 + $0x48] sm:$0xff]  ;;  %vm1017_vm1 = vmmov 0   ;;  %s1019_s26 = smov [#allocation3]  }
  0x15   :  { %v73_v24 = vld [vmem:[%s1302_s2 + $0x48] sm:$0xff]  ;;  %v39_v25 = vld [vmem:[%s1301_s1 + $0x50] sm:$0xff]  ;;  %v40_v27 = vld [vmem:[%s1301_s1 + $0x58] sm:$0xff]  ;;  %s714_s27 = sshll.u32 %s1019_s26, 4  ;;  %s715_s27 = int_to_ptr.vmem [resolvable:$true] %s714_s27 }
  0x16   :  { %819 = vmatmul.mubr.msk.f32.gmra.mrb[6].mxu0 %vm160_vm0, %v36_v19  ;;  %122 = vperm.xlu0 %989, %v72_v22   ;;  %v74_v26 = vld [vmem:[%s1302_s2 + $0x50] sm:$0xff]  ;;  %v75_v28 = vld [vmem:[%s1302_s2 + $0x58] sm:$0xff]  ;;  %v41_v29 = vld [vmem:[%s1301_s1 + $0x60] sm:$0xff]  ;;  %s991_s28 = scalar_lea.vmem %s715_s27, 16  ;;  %s995_s29 = scalar_lea.vmem %s715_s27, 32 }
  0x17   :  { %821 = vmatprep.mubr.msk.f32.mxu0 %vm160_vm0, %v37_v21  ;;  %v76_v30 = vld [vmem:[%s1302_s2 + $0x60] sm:$0xff]  ;;  %v42_v31 = vld [vmem:[%s1301_s1 + $0x68] sm:$0xff]  ;;  %v43_v33 = vld [vmem:[%s1301_s1 + $0x70] sm:$0xff]  ;;  %p992_p0 = scmp.ne.s32.totalorder %s715_s27, %s991_s28  ;;  %p996_p1 = scmp.lt.s32.totalorder %s715_s27, %s715_s27 }
  0x18   :  { %127 = vperm.xlu1 %990, %v73_v24   ;;  %v77_v32 = vld [vmem:[%s1302_s2 + $0x68] sm:$0xff]  ;;  %v78_v34 = vld [vmem:[%s1302_s2 + $0x70] sm:$0xff]  ;;  %v44_v35 = vld [vmem:[%s1301_s1 + $0x78] sm:$0xff]  ;;  %p997_p2 = scmp.lt.s32.totalorder %s995_s29, %s991_s28 }
  0x19   :  { %v79_v36 = vld [vmem:[%s1302_s2 + $0x78] sm:$0xff]  ;;  %v370_v37 = vld [vmem:[%s1304_s4] sm:$0xff]  ;;  %v371_v38 = vld [vmem:[%s1304_s4 + $0x8] sm:$0xff] }
  0x1a   :  { %822 = vmatmul.mubr.msk.f32.gmra.mrb[8].mxu0 %vm160_vm0, %v38_v23  ;;  %132 = vperm.xlu0 %989, %v74_v26   ;;  %v372_v39 = vld [vmem:[%s1304_s4 + $0x10] sm:$0xff]  ;;  %v373_v40 = vld [vmem:[%s1304_s4 + $0x18] sm:$0xff]  ;;  %v374_v41 = vld [vmem:[%s1304_s4 + $0x20] sm:$0xff]  ;;  %p998_p3 = por %p997_p2, %p996_p1 }
  0x1b   :  { %824 = vmatprep.mubr.msk.f32.mxu0 %vm160_vm0, %v39_v25  ;;  %v375_v42 = vld [vmem:[%s1304_s4 + $0x28] sm:$0xff]  ;;  %v376_v43 = vld [vmem:[%s1304_s4 + $0x30] sm:$0xff]  ;;  %v377_v44 = vld [vmem:[%s1304_s4 + $0x38] sm:$0xff] }
  0x1c   :  { %137 = vperm.xlu1 %990, %v75_v28   ;;  %v378_v45 = vld [vmem:[%s1304_s4 + $0x40] sm:$0xff]  ;;  %v379_v46 = vld [vmem:[%s1304_s4 + $0x48] sm:$0xff]  ;;  %v380_v47 = vld [vmem:[%s1304_s4 + $0x50] sm:$0xff]  ;;  %p999_p4 = pnand %p998_p3, %p992_p0 }
  0x1d   :  { %v381_v48 = vld [vmem:[%s1304_s4 + $0x58] sm:$0xff]  ;;  %v382_v49 = vld [vmem:[%s1304_s4 + $0x60] sm:$0xff]  ;;  %v383_v50 = vld [vmem:[%s1304_s4 + $0x68] sm:$0xff] }
  0x1e   :  { %825 = vmatmul.mubr.msk.f32.gmra.mrb[10].mxu0 %vm160_vm0, %v40_v27  ;;  %142 = vperm.xlu0 %989, %v76_v30   ;;  %v384_v51 = vld [vmem:[%s1304_s4 + $0x70] sm:$0xff]  ;;  %v385_v52 = vld [vmem:[%s1304_s4 + $0x78] sm:$0xff]  ;;  %v627_v53 = vld [vmem:[#allocation2] sm:$0x1] }
  0x1f   :  { %827 = vmatprep.mubr.msk.f32.mxu0 %vm160_vm0, %v41_v29  ;;  %v45_v54 = vld [vmem:[%s1303_s3] sm:$0xff] }
  0x20   :  { %147 = vperm.xlu1 %990, %v77_v32   ;;  %865 = vmatprep.mubr.f32.mxu1 %v45_v54 }
  0x22   :  { %828 = vmatmul.mubr.msk.f32.gmra.mrb[12].mxu0 %vm160_vm0, %v42_v31  ;;  %152 = vperm.xlu0 %989, %v78_v34  }
  0x23   :  { %830 = vmatprep.mubr.msk.f32.mxu0 %vm160_vm0, %v43_v33 }
  0x24   :  { %157 = vperm.xlu1 %990, %v79_v36  }
  0x26   :  { %831 = vmatmul.mubr.msk.f32.gmra.mrb[14].mxu0 %vm160_vm0, %v44_v35  ;;  %388 = vperm.xlu0 %989, %v370_v37  }
  0x28   :  { %393 = vperm.xlu1 %990, %v371_v38  }
  0x2a   :  { %398 = vperm.xlu0 %989, %v372_v39  }
  0x2c   :  { %403 = vperm.xlu1 %990, %v373_v40  }
  0x2e   :  { %408 = vperm.xlu0 %989, %v374_v41  }
  0x30   :  { %413 = vperm.xlu1 %990, %v375_v42  }
  0x32   :  { %418 = vperm.xlu0 %989, %v376_v43  }
  0x34   :  { %423 = vperm.xlu1 %990, %v377_v44  }
  0x36   :  { %428 = vperm.xlu0 %989, %v378_v45  }
  0x38   :  { %433 = vperm.xlu1 %990, %v379_v46  }
  0x3a   :  { %438 = vperm.xlu0 %989, %v380_v47  }
  0x3c   :  { %443 = vperm.xlu1 %990, %v381_v48  }
  0x3e   :  { %448 = vperm.xlu0 %989, %v382_v49  }
  0x40   :  { %453 = vperm.xlu1 %990, %v383_v50  }
  0x42   :  { %458 = vperm.xlu0 %989, %v384_v51  }
  0x44   :  { %463 = vperm.xlu1 %990, %v385_v52  }
  0x46   :  { %630 = vperm.xlu0 %989, %v627_v53  }
  0x84   :  { %v93_v55 = vpop.permute.xlu1 %92 }
  0x85   :  { %v83_v56 = vpop.permute.xlu0 %82 }
  0x88   :  { %v98_v57 = vpop.permute.xlu1 %97 }
  0x89   :  { %v88_v58 = vpop.permute.xlu0 %87 }
  0x8c   :  { %v108_v59 = vpop.permute.xlu1 %107 }
  0x8d   :  { %v103_v60 = vpop.permute.xlu0 %102 }
  0x91   :  { %v113_v5 = vpop.permute.xlu0 %112 }
  0x93   :  { %v118_v2 = vpop.permute.xlu1 %117 }
  0x95   :  { %v123_v18 = vpop.permute.xlu0 %122 }
  0x97   :  { %v128_v15 = vpop.permute.xlu1 %127 }
  0x99   :  { %v133_v30 = vpop.permute.xlu0 %132 }
  0x9b   :  { %v138_v27 = vpop.permute.xlu1 %137 }
  0x9d   :  { %v143_v43 = vpop.permute.xlu0 %142 }
  0x9f   :  { %v148_v40 = vpop.permute.xlu1 %147 }
  0xa3   :  { %v158_v52 = vpop.permute.xlu1 %157 }
  0xdd   :  { %v811_v61 = vpop.f32.mrb[0].mxu0 }
  0xde   :  { %v281_v62 = vadd.f32 %v811_v61, %v88_v58  ;;  %v275_v63 = vpop.f32.mrb[1].mxu0 }
  0xdf   :  { %v276_v0 = vadd.f32 %v275_v63, %v83_v56  ;;  %v46_v63 = vld [vmem:[%s1303_s3 + $0x8] sm:$0xff] }
  0xe0   :  { %v355_v1 = vmax.f32 %v281_v62, 0.0 }
  0xe1   :  { %v354_v3 = vmax.f32 %v276_v0, 0.0  ;;  %v814_v4 = vpop.f32.mrb[2].mxu0  ;;  %v47_v0 = vld [vmem:[%s1303_s3 + $0x10] sm:$0xff] }
  0xe2   :  { %v291_v6 = vadd.f32 %v814_v4, %v98_v57  ;;  %v285_v7 = vpop.f32.mrb[3].mxu0  ;;  %v51_v4 = vld [vmem:[%s1303_s3 + $0x30] sm:$0xff] }
  0xe3   :  { %v286_v8 = vadd.f32 %v285_v7, %v93_v55  ;;  %v928_v9 = vpack.c.bf16 %v355_v1, %v354_v3  ;;  %v153_v55 = vpop.permute.xlu0 %152  ;;  %v48_v1 = vld [vmem:[%s1303_s3 + $0x18] sm:$0xff]  ;;  %v50_v3 = vld [vmem:[%s1303_s3 + $0x28] sm:$0xff] }
  0xe4   :  { %v357_v10 = vmax.f32 %v291_v6, 0.0  ;;  %v53_v6 = vld [vmem:[%s1303_s3 + $0x40] sm:$0xff]  ;;  %v54_v7 = vld [vmem:[%s1303_s3 + $0x48] sm:$0xff] }
  0xe5   :  { %v356_v11 = vmax.f32 %v286_v8, 0.0  ;;  %v817_v12 = vpop.f32.mrb[4].mxu0  ;;  %929 = vmatprep.subr.bf16.mxu1 %v928_v9  ;;  %v55_v8 = vld [vmem:[%s1303_s3 + $0x50] sm:$0xff] }
  0xe6   :  { %v301_v13 = vadd.f32 %v817_v12, %v108_v59  ;;  %v295_v14 = vpop.f32.mrb[5].mxu0  ;;  %931 = vmatpush3.bf16.msra.mxu1 %v928_v9  ;;  %v56_v9 = vld [vmem:[%s1303_s3 + $0x58] sm:$0xff]  ;;  %v59_v12 = vld [vmem:[%s1303_s3 + $0x70] sm:$0xff] }
  0xe7   :  { %v932_v16 = vpack.c.bf16 %v357_v10, %v356_v11  ;;  %v296_v17 = vadd.f32 %v295_v14, %v103_v60  ;;  %v57_v10 = vld [vmem:[%s1303_s3 + $0x60] sm:$0xff]  ;;  %v58_v11 = vld [vmem:[%s1303_s3 + $0x68] sm:$0xff]  ;;  %v1016_v14 = vmov 0.0|0.0  }
  0xe8   :  { %v359_v19 = vmax.f32 %v301_v13, 0.0  ;;  %v60_v13 = vld [vmem:[%s1303_s3 + $0x78] sm:$0xff]  ;;  %960 = vmatprep.subr.bf16.mxu0 %v1016_v14 }
  0xe9   :  { %v358_v20 = vmax.f32 %v296_v17, 0.0  ;;  %v820_v21 = vpop.f32.mrb[6].mxu0  ;;  %933 = vmatprep.subr.bf16.mxu1 %v932_v16  ;;  %v389_v17 = vpop.permute.xlu0 %388 }
  0xea   :  { %v311_v22 = vadd.f32 %v820_v21, %v118_v2  ;;  %v305_v23 = vpop.f32.mrb[7].mxu0  ;;  %935 = vmatpush3.bf16.msra.mxu1 %v932_v16  ;;  %v49_v2 = vld [vmem:[%s1303_s3 + $0x20] sm:$0xff]  ;;  %v394_v16 = vpop.permute.xlu1 %393 }
  0xeb   :  { %v936_v24 = vpack.c.bf16 %v359_v19, %v358_v20  ;;  %v306_v25 = vadd.f32 %v305_v23, %v113_v5  ;;  %v52_v5 = vld [vmem:[%s1303_s3 + $0x38] sm:$0xff] }
  0xec   :  { %v361_v26 = vmax.f32 %v311_v22, 0.0 }
  0xed   :  { %v360_v28 = vmax.f32 %v306_v25, 0.0  ;;  %v823_v29 = vpop.f32.mrb[8].mxu0  ;;  %937 = vmatprep.subr.bf16.mxu1 %v936_v24  ;;  %v399_v19 = vpop.permute.xlu0 %398 }
  0xee   :  { %v321_v31 = vadd.f32 %v823_v29, %v128_v15  ;;  %v315_v32 = vpop.f32.mrb[9].mxu0  ;;  %939 = vmatpush3.bf16.msra.mxu1 %v936_v24  ;;  %v1018_v15 = vmov 0.0  }
  0xef   :  { %v940_v33 = vpack.c.bf16 %v361_v26, %v360_v28  ;;  %v316_v34 = vadd.f32 %v315_v32, %v123_v18  ;;  %921 = vmatprep.mubr.msk.f32.mxu0 %vm1017_vm1, %v1018_v15  ;;  %v404_v18 = vpop.permute.xlu1 %403 }
  0xf0   :  { %v363_v35 = vmax.f32 %v321_v31, 0.0 }
  0xf1   :  { %v362_v36 = vmax.f32 %v316_v34, 0.0  ;;  %v826_v37 = vpop.f32.mrb[10].mxu0  ;;  %941 = vmatprep.subr.bf16.mxu1 %v940_v33  ;;  %v409_v21 = vpop.permute.xlu0 %408 }
  0xf2   :  { %v331_v38 = vadd.f32 %v826_v37, %v138_v27  ;;  %v325_v39 = vpop.f32.mrb[11].mxu0  ;;  %943 = vmatpush3.bf16.msra.mxu1 %v940_v33 }
  0xf3   :  { %v944_v41 = vpack.c.bf16 %v363_v35, %v362_v36  ;;  %v326_v42 = vadd.f32 %v325_v39, %v133_v30  ;;  %v414_v20 = vpop.permute.xlu1 %413 }
  0xf4   :  { %v365_v44 = vmax.f32 %v331_v38, 0.0 }
  0xf5   :  { %v364_v45 = vmax.f32 %v326_v42, 0.0  ;;  %v829_v46 = vpop.f32.mrb[12].mxu0  ;;  %945 = vmatprep.subr.bf16.mxu1 %v944_v41  ;;  %v419_v30 = vpop.permute.xlu0 %418 }
  0xf6   :  { %v341_v47 = vadd.f32 %v829_v46, %v148_v40  ;;  %v335_v48 = vpop.f32.mrb[13].mxu0  ;;  %947 = vmatpush3.bf16.msra.mxu1 %v944_v41 }
  0xf7   :  { %v948_v49 = vpack.c.bf16 %v365_v44, %v364_v45  ;;  %v336_v50 = vadd.f32 %v335_v48, %v143_v43  ;;  %v424_v27 = vpop.permute.xlu1 %423 }
  0xf8   :  { %v367_v51 = vmax.f32 %v341_v47, 0.0 }
  0xf9   :  { %v366_v53 = vmax.f32 %v336_v50, 0.0  ;;  %v832_v54 = vpop.f32.mrb[14].mxu0  ;;  %949 = vmatprep.subr.bf16.mxu1 %v948_v49  ;;  %v429_v43 = vpop.permute.xlu0 %428 }
  0xfa   :  { %v351_v56 = vadd.f32 %v832_v54, %v158_v52  ;;  %v345_v57 = vpop.f32.mrb[15].mxu0  ;;  %951 = vmatpush3.bf16.msra.mxu1 %v948_v49 }
  0xfb   :  { %v952_v58 = vpack.c.bf16 %v367_v51, %v366_v53  ;;  %v346_v59 = vadd.f32 %v345_v57, %v153_v55  ;;  %v434_v40 = vpop.permute.xlu1 %433 }
  0xfc   :  { %v369_v60 = vmax.f32 %v351_v56, 0.0 }
  0xfd   :  { %v368_v61 = vmax.f32 %v346_v59, 0.0  ;;  %953 = vmatprep.subr.bf16.mxu1 %v952_v58  ;;  %v439_v55 = vpop.permute.xlu0 %438 }
  0xfe   :  { %955 = vmatpush3.bf16.msra.mxu1 %v952_v58 }
  0xff   :  { %v956_v62 = vpack.c.bf16 %v369_v60, %v368_v61  ;;  %v444_v52 = vpop.permute.xlu1 %443 }
 0x101   :  { %957 = vmatprep.subr.bf16.mxu1 %v956_v62 }
 0x102   :  { %959 = vmatpush3.bf16.msra.mxu1 %v956_v62 }
 0x105   :  { %866 = vmatmul.mubr.f32.vlgmr.msra.gmra.mrb[0].mxu1 %v46_v63 }
 0x106   :  { %868 = vmatprep.mubr.f32.mxu1 %v47_v0 }
 0x109   :  { %869 = vmatmul.mubr.f32.gmra.mrb[2].mxu1 %v48_v1  ;;  %v454_v1 = vpop.permute.xlu1 %453 }
 0x10a   :  { %871 = vmatprep.mubr.f32.mxu1 %v49_v2 }
 0x10d   :  { %872 = vmatmul.mubr.f32.gmra.mrb[4].mxu1 %v50_v3 }
 0x10e   :  { %874 = vmatprep.mubr.f32.mxu1 %v51_v4  ;;  %v449_v4 = vpop.permute.xlu0 %448 }
 0x111   :  { %875 = vmatmul.mubr.f32.gmra.mrb[6].mxu1 %v52_v5 }
 0x112   :  { %877 = vmatprep.mubr.f32.mxu1 %v53_v6 }
 0x115   :  { %878 = vmatmul.mubr.f32.gmra.mrb[8].mxu1 %v54_v7 }
 0x116   :  { %880 = vmatprep.mubr.f32.mxu1 %v55_v8 }
 0x119   :  { %881 = vmatmul.mubr.f32.gmra.mrb[10].mxu1 %v56_v9 }
 0x11a   :  { %883 = vmatprep.mubr.f32.mxu1 %v57_v10 }
 0x11d   :  { %884 = vmatmul.mubr.f32.gmra.mrb[12].mxu1 %v58_v11 }
 0x11e   :  { %886 = vmatprep.mubr.f32.mxu1 %v59_v12 }
 0x121   :  { %887 = vmatmul.mubr.f32.gmra.mrb[14].mxu1 %v60_v13  ;;  %v464_v13 = vpop.permute.xlu1 %463 }
 0x1d8   :  { %v867_v22 = vpop.f32.mrb[0].mxu1 }
 0x1d9   :  { %v538_v23 = vadd.f32 %v867_v22, %v394_v16  ;;  %v532_v24 = vpop.f32.mrb[1].mxu1 }
 0x1da   :  { %v533_v25 = vadd.f32 %v532_v24, %v389_v17  ;;  %v459_v17 = vpop.permute.xlu0 %458 }
 0x1db   :  { %v612_v26 = vmax.f32 %v538_v23, 0.0 }
 0x1dc   :  { %v611_v28 = vmax.f32 %v533_v25, 0.0  ;;  %v870_v29 = vpop.f32.mrb[2].mxu1  ;;  %v61_v25 = vld [vmem:[%s1305_s5] sm:$0x1] }
 0x1dd   :  { %v548_v31 = vadd.f32 %v870_v29, %v404_v18  ;;  %v542_v32 = vpop.f32.mrb[3].mxu1 }
 0x1de   :  { %v961_v33 = vpack.c.bf16 %v612_v26, %v611_v28  ;;  %v543_v34 = vadd.f32 %v542_v32, %v399_v19  ;;  %v633_v26 = vlaneseq  ;;  %v631_v29 = vpop.permute.xlu0 %630 }
 0x1df   :  { %v614_v35 = vmax.f32 %v548_v31, 0.0 }
 0x1e0   :  { %v613_v36 = vmax.f32 %v543_v34, 0.0  ;;  %v873_v37 = vpop.f32.mrb[4].mxu1  ;;  %962 = vmatpush3.bf16.msra.mxu0 %v961_v33 }
 0x1e1   :  { %v558_v38 = vadd.f32 %v873_v37, %v414_v20  ;;  %v552_v39 = vpop.f32.mrb[5].mxu1  ;;  %963 = vmatprep.subr.bf16.mxu0 %v1016_v14 }
 0x1e2   :  { %v964_v41 = vpack.c.bf16 %v614_v35, %v613_v36  ;;  %v553_v42 = vadd.f32 %v552_v39, %v409_v21 }
 0x1e3   :  { %v616_v44 = vmax.f32 %v558_v38, 0.0 }
 0x1e4   :  { %v615_v45 = vmax.f32 %v553_v42, 0.0  ;;  %v876_v46 = vpop.f32.mrb[6].mxu1  ;;  %965 = vmatpush3.bf16.msra.mxu0 %v964_v41 }
 0x1e5   :  { %v568_v47 = vadd.f32 %v876_v46, %v424_v27  ;;  %v562_v48 = vpop.f32.mrb[7].mxu1  ;;  %966 = vmatprep.subr.bf16.mxu0 %v1016_v14  ;;  %v634_v27 = vshrl.u32 %v633_v26, 7 }
 0x1e6   :  { %v967_v49 = vpack.c.bf16 %v616_v44, %v615_v45  ;;  %v563_v50 = vadd.f32 %v562_v48, %v419_v30 }
 0x1e7   :  { %v618_v51 = vmax.f32 %v568_v47, 0.0  ;;  %v635_v28 = vsub.s32 0, %v634_v27 }
 0x1e8   :  { %v617_v53 = vmax.f32 %v563_v50, 0.0  ;;  %v879_v54 = vpop.f32.mrb[8].mxu1  ;;  %968 = vmatpush3.bf16.msra.mxu0 %v967_v49 }
 0x1e9   :  { %v578_v56 = vadd.f32 %v879_v54, %v434_v40  ;;  %v572_v57 = vpop.f32.mrb[9].mxu1  ;;  %969 = vmatprep.subr.bf16.mxu0 %v1016_v14  ;;  %v636_v30 = vrot.slane %v631_v29, %v635_v28 }
 0x1ea   :  { %v970_v58 = vpack.c.bf16 %v618_v51, %v617_v53  ;;  %v573_v59 = vadd.f32 %v572_v57, %v429_v43 }
 0x1eb   :  { %v620_v60 = vmax.f32 %v578_v56, 0.0 }
 0x1ec   :  { %v619_v61 = vmax.f32 %v573_v59, 0.0  ;;  %v882_v62 = vpop.f32.mrb[10].mxu1  ;;  %971 = vmatpush3.bf16.msra.mxu0 %v970_v58 }
 0x1ed   :  { %v588_v63 = vadd.f32 %v882_v62, %v444_v52  ;;  %v582_v0 = vpop.f32.mrb[11].mxu1  ;;  %972 = vmatprep.subr.bf16.mxu0 %v1016_v14 }
 0x1ee   :  { %v973_v2 = vpack.c.bf16 %v620_v60, %v619_v61  ;;  %v583_v3 = vadd.f32 %v582_v0, %v439_v55 }
 0x1ef   :  { %v622_v5 = vmax.f32 %v588_v63, 0.0 }
 0x1f0   :  { %v621_v6 = vmax.f32 %v583_v3, 0.0  ;;  %v885_v7 = vpop.f32.mrb[12].mxu1  ;;  %974 = vmatpush3.bf16.msra.mxu0 %v973_v2 }
 0x1f1   :  { %v598_v8 = vadd.f32 %v885_v7, %v454_v1  ;;  %v592_v9 = vpop.f32.mrb[13].mxu1  ;;  %975 = vmatprep.subr.bf16.mxu0 %v1016_v14 }
 0x1f2   :  { %v976_v10 = vpack.c.bf16 %v622_v5, %v621_v6  ;;  %v593_v11 = vadd.f32 %v592_v9, %v449_v4 }
 0x1f3   :  { %v624_v12 = vmax.f32 %v598_v8, 0.0 }
 0x1f4   :  { %v623_v15 = vmax.f32 %v593_v11, 0.0  ;;  %v888_v16 = vpop.f32.mrb[14].mxu1  ;;  %977 = vmatpush3.bf16.msra.mxu0 %v976_v10 }
 0x1f5   :  { %v608_v18 = vadd.f32 %v888_v16, %v464_v13  ;;  %v602_v19 = vpop.f32.mrb[15].mxu1  ;;  %978 = vmatprep.subr.bf16.mxu0 %v1016_v14 }
 0x1f6   :  { %v979_v20 = vpack.c.bf16 %v624_v12, %v623_v15  ;;  %v603_v21 = vadd.f32 %v602_v19, %v459_v17 }
 0x1f7   :  { %v626_v22 = vmax.f32 %v608_v18, 0.0 }
 0x1f8   :  { %v625_v23 = vmax.f32 %v603_v21, 0.0  ;;  %980 = vmatpush3.bf16.msra.mxu0 %v979_v20 }
 0x1f9   :  { %981 = vmatprep.subr.bf16.mxu0 %v1016_v14 }
 0x1fa   :  { %v982_v24 = vpack.c.bf16 %v626_v22, %v625_v23 }
 0x1fc   :  { %983 = vmatpush3.bf16.msra.mxu0 %v982_v24 }
 0x1ff   :  { %922 = vmatmul.mubr.f32.vlgmr.msra.gmra.mrb[16].mxu0 %v61_v25 }
 0x2d2   :  { %v703_v31 = vpop.f32.mrb[16].mxu0 }
 0x2d3   :  { %v704_v32 = vadd.f32 %v703_v31, %v636_v30  ;;  %v923_v33 = vpop.f32.mrb[17].mxu0 }
 0x2d5   :  { %707 = vst [vmem:[#allocation3] sm:$0x1] %v704_v32 }
 0x2d6   :  { %1002 = shalt.err (!%p999_p4)
}
 0x2d7   :  { %s1003_s8 = scalar_lea.hbm %s1307_s7, 16 }
 0x2d8   :  { %p1004_p5 = scmp.ne.s32.totalorder %s1307_s7, %s1003_s8  ;;  %p1007_p6 = scmp.lt.u32.totalorder %s1003_s8, %s1307_s7 }
 0x2da   :  { %p1009_p7 = pnand %p1007_p6, %p1004_p5 }
 0x2dc   :  { %1012 = shalt.err (!%p1009_p7)
}
 0x2dd   :  { %717 = dma.vmem_to_hbm [thread:$0]  %s715_s27, 16, %s1307_s7, [#allocation4]  }
 0x2de   :  { %1013 = dma.done.wait [#allocation4], 16  }
 0x2df   :  { %1014 = vsyncadd [#allocation4], 4294967280 }
 0x2e0   :  { %721 = vsyncpa [#allocation4], 1 }

</bundles_post_ra>
